<compile_context>
chip_gen: v7x
topology: tpu7x:2x2x1
jax: 0.10.0
libtpu: 0.0.40
codegen_flags: <defaults>
</compile_context>

<pallas_src>
import jax
import jax.numpy as jnp
from jax.experimental import pallas as pl
from jax.experimental.pallas import tpu as pltpu

_LANE = 128


def _outconv_kernel(x_ref, w_ref, b_ref, o_ref):
    # x_ref: (1, C_in, T)   lane-dense spatial tile of one batch element
    # w_ref: (C_out, C_in)  full weight (resident across grid)
    # b_ref: (C_out, 1)     bias column (broadcasts over lanes)
    # o_ref: (1, C_out, T)
    acc = jnp.dot(w_ref[...], x_ref[0], preferred_element_type=jnp.float32)
    o_ref[0] = (acc + b_ref[...]).astype(o_ref.dtype)


def out_conv(x_nchw, weight, bias, *, tile_hw=4096):
    """1x1 conv forward.

    x_nchw : (N, C_in, H, W)
    weight : (C_out, C_in, 1, 1)   -- PyTorch Conv2d weight layout
    bias   : (C_out,)
    returns (N, C_out, H, W)
    """
    N, C_in, H, W = x_nchw.shape
    C_out = weight.shape[0]
    HW = H * W

    # NCHW consumed directly: flatten spatial only (free reshape, no transpose).
    x = x_nchw.reshape(N, C_in, HW)
    w_mat = weight.reshape(C_out, C_in)   # (C_out, C_in)
    b_col = bias.reshape(C_out, 1)        # (C_out, 1)

    itemsize = jnp.dtype(x.dtype).itemsize

    # Tile size: multiple of 128 lanes, clamped to the lane-aligned problem,
    # then shrunk (if ever needed) to respect a conservative VMEM budget for
    # the double-buffered input + output tiles.
    hw_aligned = pl.cdiv(HW, _LANE) * _LANE
    t = max(_LANE, min(pl.cdiv(tile_hw, _LANE) * _LANE, hw_aligned))
    vmem_budget = 24 << 20  # leave headroom under the 64 MiB scoped limit
    while t > _LANE and 2 * (C_in + C_out) * t * itemsize > vmem_budget:
        t = max(_LANE, (t // 2 // _LANE) * _LANE)

    grid = (N, pl.cdiv(HW, t))

    cost = pl.CostEstimate(
        flops=2 * N * HW * C_in * C_out,
        transcendentals=0,
        bytes_accessed=itemsize * (N * C_in * HW      # x
                                   + C_out * C_in     # W
                                   + C_out            # b
                                   + N * C_out * HW), # out
    )

    out = pl.pallas_call(
        _outconv_kernel,
        out_shape=jax.ShapeDtypeStruct((N, C_out, HW), x.dtype),
        grid_spec=pltpu.PrefetchScalarGridSpec(
            num_scalar_prefetch=0,
            grid=grid,
            in_specs=[
                pl.BlockSpec((1, C_in, t), lambda n, j: (n, 0, j)),   # x tile
                pl.BlockSpec((C_out, C_in), lambda n, j: (0, 0)),     # weight
                pl.BlockSpec((C_out, 1), lambda n, j: (0, 0)),        # bias
            ],
            out_specs=pl.BlockSpec((1, C_out, t), lambda n, j: (n, 0, j)),
        ),
        compiler_params=pltpu.CompilerParams(
            dimension_semantics=("parallel", "parallel"),
            vmem_limit_bytes=64 << 20,
        ),
        cost_estimate=cost,
    )(x, w_mat, b_col)

    # Restore (N, C_out, H, W) -- reshape only, no transpose, no slicing.
    return out.reshape(N, C_out, H, W)


if __name__ == "__main__":
    key = jax.random.PRNGKey(0)
    k_x, k_w, k_b = jax.random.split(key, 3)

    N, C_in, C_out, H, W = 2, 4, 3, 16, 16

    x = jax.random.normal(k_x, (N, C_in, H, W), dtype=jnp.float32)
    # Deterministic synthetic parameters (Conv2d(in_ch, out_ch, 1) shapes).
    weight = jax.random.normal(k_w, (C_out, C_in, 1, 1), dtype=jnp.float32) * 0.1
    bias = jax.random.normal(k_b, (C_out,), dtype=jnp.float32) * 0.1

    y = out_conv(x, weight, bias)
    y = jax.block_until_ready(y)

    # Reference check (plain JAX 1x1 conv).
    y_ref = jnp.einsum("nchw,oc->nohw", x, weight.reshape(C_out, C_in)) \
        + bias.reshape(1, C_out, 1, 1)
    assert y.shape == (N, C_out, H, W)
    assert jnp.allclose(y, y_ref, atol=1e-5, rtol=1e-5)

    print("KERNEL_OK")
</pallas_src>

<mosaic_0001>
module attributes {stable_mosaic.version = 11 : i64} {
  func.func @_outconv_kernel(%arg0: i32, %arg1: i32, %arg2: memref<1x4x256xf32, #tpu.memory_space<vmem>>, %arg3: memref<3x4xf32, #tpu.memory_space<vmem>>, %arg4: memref<3x1xf32, #tpu.memory_space<vmem>>, %arg5: memref<1x3x256xf32, #tpu.memory_space<vmem>>) attributes {dimension_semantics = [#tpu.dimension_semantics<parallel>, #tpu.dimension_semantics<parallel>], iteration_bounds = array<i64: 2, 1>, scalar_prefetch = 0 : i64, scratch_operands = 0 : i64, tpu.core_type = #tpu.core_type<tc>, window_params = [{transform_indices = @transform_0, window_bounds = array<i64: 1, 4, 256>}, {pipeline_mode = #tpu.pipeline_mode<synchronous>, transform_indices = @transform_1, window_bounds = array<i64: 3, 4>}, {pipeline_mode = #tpu.pipeline_mode<synchronous>, transform_indices = @transform_2, window_bounds = array<i64: 3, 1>}, {transform_indices = @transform_3, window_bounds = array<i64: 1, 3, 256>}]} {
    %c0 = arith.constant 0 : index
    %c0_0 = arith.constant 0 : index
    %0 = vector.load %arg3[%c0, %c0_0] : memref<3x4xf32, #tpu.memory_space<vmem>>, vector<3x4xf32>
    %c0_1 = arith.constant 0 : index
    %c0_2 = arith.constant 0 : index
    %c0_3 = arith.constant 0 : index
    %1 = vector.load %arg2[%c0_1, %c0_2, %c0_3] : memref<1x4x256xf32, #tpu.memory_space<vmem>>, vector<1x4x256xf32>
    %2 = vector.shape_cast %1 : vector<1x4x256xf32> to vector<4x256xf32>
    %cst = arith.constant dense<0.000000e+00> : vector<3x256xf32>
    %3 = tpu.matmul %0, %2, %cst {dimension_numbers = #tpu.dot_dimension_numbers<[1], [0], [0], [1], [0, 0, 1, 1], [], []>} : vector<3x4xf32>, vector<4x256xf32>, vector<3x256xf32> -> vector<3x256xf32>
    %c0_4 = arith.constant 0 : index
    %c0_5 = arith.constant 0 : index
    %4 = vector.load %arg4[%c0_4, %c0_5] : memref<3x1xf32, #tpu.memory_space<vmem>>, vector<3x1xf32>
    %5 = vector.broadcast %4 : vector<3x1xf32> to vector<3x256xf32>
    %6 = arith.addf %3, %5 : vector<3x256xf32>
    %c0_6 = arith.constant 0 : index
    %c0_7 = arith.constant 0 : index
    %c0_8 = arith.constant 0 : index
    %7 = vector.load %arg5[%c0_6, %c0_7, %c0_8] : memref<1x3x256xf32, #tpu.memory_space<vmem>>, vector<1x3x256xf32>
    %8 = vector.shape_cast %7 : vector<1x3x256xf32> to vector<3x256xf32>
    %9 = vector.shape_cast %6 : vector<3x256xf32> to vector<1x3x256xf32>
    tpu.vector_store %arg5[%c0_6, %c0_7, %c0_8], %9 {strides = array<i32>} : memref<1x3x256xf32, #tpu.memory_space<vmem>>, vector<1x3x256xf32>,
    return
  }
  func.func @transform_0(%arg0: i32, %arg1: i32) -> (i32, i32, i32) {
    %c0_i32 = arith.constant 0 : i32
    %c0_i32_0 = arith.constant 0 : i32
    return %arg0, %c0_i32, %arg1 : i32, i32, i32
  }
  func.func @transform_1(%arg0: i32, %arg1: i32) -> (i32, i32) {
    %c0_i32 = arith.constant 0 : i32
    %c0_i32_0 = arith.constant 0 : i32
    %c0_i32_1 = arith.constant 0 : i32
    return %c0_i32, %c0_i32_0 : i32, i32
  }
  func.func @transform_2(%arg0: i32, %arg1: i32) -> (i32, i32) {
    %c0_i32 = arith.constant 0 : i32
    %c0_i32_0 = arith.constant 0 : i32
    %c0_i32_1 = arith.constant 0 : i32
    return %c0_i32, %c0_i32_0 : i32, i32
  }
  func.func @transform_3(%arg0: i32, %arg1: i32) -> (i32, i32, i32) {
    %c0_i32 = arith.constant 0 : i32
    %c0_i32_0 = arith.constant 0 : i32
    return %arg0, %c0_i32, %arg1 : i32, i32, i32
  }
}

</mosaic_0001>

<bundles_post_ra>
// kernel: tpu_custom_call.1
= control target key start
LH: loop header
LB: loop body
LE: loop exit
PB: predicated region body
PF: predicated region fallthrough
CT: control target
= control target key end

     0   :  { %8 = vsyncpa [#allocation3], 0  ;;  %s1001_s0 = inlined_call_operand.hbm [shape: f32[2,4,256], index: 0, kind: input, shape index: {}]   ;;  %s1002_s1 = inlined_call_operand.hbm [shape: f32[3,4], index: 1, kind: input, shape index: {}]   ;;  %s1003_s2 = inlined_call_operand.hbm [shape: f32[3,1], index: 2, kind: input, shape index: {}]   ;;  %s1004_s3 = inlined_call_operand.hbm [shape: f32[2,3,256], index: 3, kind: output, shape index: {}]  }
   0x1   :  { %10 = vsyncpa [#allocation3 + $0x1], 0 }
   0x2   :  { %11 = vsyncpa [#allocation6], 0 }
   0x3   :  { %12 = vsyncpa [#allocation4], 0 }
   0x4   :  { %14 = vsyncpa [#allocation4 + $0x1], 0  ;;  %s758_s12 = smov 0   ;;  %s760_s13 = smov 0  }
   0x5   :  { %s762_s14 = smov 0   ;;  %s764_s15 = smov 0  }
   0x6   :  { %s766_s16 = smov 0   ;;  %s768_s17 = smov 0  }
   0x7 LB: > { %s447_s18 = sadd.s32 4294967295, %s730_s17   ;;  %s448_s19 = sadd.s32 4294967294, %s730_s17   ;;  %s730_s17 = sphi %s768_s17, %s20_s17   ;;  %s726_s16 = sphi %s766_s16, %s1027_s16   ;;  %s722_s15 = sphi %s764_s15, %s1026_s15   ;;  %s718_s14 = sphi %s762_s14, %s1025_s14   ;;  %s714_s13 = sphi %s760_s13, %s1024_s13   ;;  %s710_s12 = sphi %s758_s12, %s1023_s12  }
   0x8   : > { %p54_p0 = scmp.ne.s32.totalorder %s714_s13, %s710_s12  ;;  %p792_p1 = scmp.eq.s32.totalorder %s447_s18, 0 }
   0x9   : > { %p796_p2 = scmp.eq.s32.totalorder %s447_s18, 1  ;;  %p128_p3 = scmp.eq.s32.totalorder %s448_s19, 1 }
   0xa   : > { %s1009_s20 = scalar_select %p792_p1, 1, 0 }
   0xb   : > { %s1010_s21 = scalar_select %p796_p2, 1, 0 }
   0xc   : > { %p802_p4 = por %p792_p1, %p54_p0  ;;  %p449_p5 = scmp.ge.s32.totalorder %s730_s17, 1 }
   0xd   : > { %p807_p6 = por %p128_p3, %p54_p0  ;;  %p135_p7 = scmp.lt.s32.totalorder %s730_s17, 3 }
   0xe   : > { %s1011_s22 = scalar_select %p802_p4, 1, 0 }
   0xf   : > { %s1012_s23 = scalar_select %p807_p6, 1, 0 }
  0x10   : > { %p812_p8 = pnand %p449_p5, %p135_p7  ;;  %s732_s25 = smov [#allocation5]  }
  0x11   : > { %s148_s26 = sshll.u32 %s732_s25, 4  ;;  %s733_s27 = smov [#allocation7]   ;;  %s149_s26 = int_to_ptr.vmem [resolvable:$true] %s148_s26 }
  0x12   : > { %s1013_s24 = scalar_select %p812_p8, 1, 0 }
  0x13   : > { %p483_p10 = pneg %p812_p8  ;;  %s159_s28 = sshll.u32 %s733_s27, 4  ;;  %s825_s28 = int_to_ptr.vmem [resolvable:$true] %s159_s28 }
  0x14   : > { %s558_s5 = scalar_lea.hbm %s1002_s1, 64 }
  0x15   : > { %p821_p11 = pnand %p483_p10, %p792_p1  ;;  %p559_p12 = scmp.ne.s32.totalorder %s1002_s1, %s558_s5 }
  0x16   : > { %p565_p5 = scmp.lt.u32.totalorder %s558_s5, %s1002_s1 }
  0x17   : > { %p560_p13 = pneg %p821_p11 }
  0x19   : > { %p561_p0 = pnand %p560_p13, %p559_p12 }
  0x1b   : > { %p562_p3 = pneg %p561_p0 }
  0x1d   : > { %p567_p7 = pnand %p565_p5, %p562_p3 }
  0x1f   : > { %570 = shalt.err (!%p567_p7)
}
  0x20   : > { %s571_s10 = scalar_lea.vmem %s149_s26, 64  ;;  %p579_p1 = scmp.lt.s32.totalorder %s149_s26, %s149_s26 }
  0x21   : > { %p572_p10 = scmp.ne.s32.totalorder %s149_s26, %s571_s10  ;;  %p580_p4 = scmp.lt.s32.totalorder %s571_s10, %s571_s10 }
  0x23   : > { %p574_p9 = pnand %p572_p10, %p560_p13  ;;  %p581_p8 = por %p580_p4, %p579_p1 }
  0x25   : > { %p575_p6 = pneg %p574_p9 }
  0x27   : > { %p582_p2 = pnand %p581_p8, %p575_p6 }
  0x29   : > { %585 = shalt.err (!%p582_p2)
}
  0x2a   : > { %486 = dma.hbm_to_vmem [thread:$0]  (!%p821_p11), %s1002_s1, 64, %s149_s26, [#allocation6]  }
  0x2b   : > { %s586_s27 = scalar_lea.hbm %s1003_s2, 64 }
  0x2c   : > { %p587_p9 = scmp.ne.s32.totalorder %s1003_s2, %s586_s27  ;;  %p593_p2 = scmp.lt.u32.totalorder %s586_s27, %s1003_s2 }
  0x2e   : > { %p589_p1 = pnand %p587_p9, %p560_p13 }
  0x30   : > { %p590_p4 = pneg %p589_p1 }
  0x32   : > { %p595_p6 = pnand %p593_p2, %p590_p4 }
  0x34   : > { %598 = shalt.err (!%p595_p6)
}
  0x35   : > { %s599_s26 = scalar_lea.vmem %s825_s28, 64  ;;  %p607_p3 = scmp.lt.s32.totalorder %s825_s28, %s825_s28 }
  0x36   : > { %p600_p8 = scmp.ne.s32.totalorder %s825_s28, %s599_s26  ;;  %p608_p5 = scmp.lt.s32.totalorder %s599_s26, %s599_s26 }
  0x38   : > { %p602_p12 = pnand %p600_p8, %p560_p13  ;;  %p609_p7 = por %p608_p5, %p607_p3 }
  0x3a   : > { %p603_p0 = pneg %p602_p12 }
  0x3c   : > { %p610_p10 = pnand %p609_p7, %p603_p0 }
  0x3e   : > { %613 = shalt.err (!%p610_p10)
}
  0x3f   : > { %489 = dma.hbm_to_vmem [thread:$0]  (!%p821_p11), %s1003_s2, 64, %s825_s28, [#allocation6]  }
  0x40   : > { %s32_s9 = sadd.s32 1, %s726_s16  ;;  %s41_s10 = sadd.s32 1, %s718_s14 }
  0x41   : > { %p34_p13 = scmp.ge.s32.totalorder %s32_s9, 2  ;;  %p48_p9 = scmp.ne.s32.totalorder %s718_s14, %s714_s13 }
  0x42   : > { %p49_p1 = scmp.eq.s32.totalorder %s730_s17, 0  ;;  %p500_p4 = scmp.lt.s32.totalorder %s730_s17, 2 }
  0x43   : > { %s1029_s9 = smov (%p34_p13, %s32_s9), 0  ;;  %p1015_p6 = scmp.ne.s32.totalorder %s1010_s21, 0 }
  0x44   : > { %p50_p2 = por %p49_p1, %p48_p9  ;;  %s36_s11 = ssub.s32 %s726_s16, %s1029_s9 }
  0x45   : > { %p884_p8 = por %p1015_p6, %p48_p9  ;;  %s170_s18 = sand.u32 1, %s718_s14  }
  0x46   : > { %p39_p12 = scmp.eq.s32.totalorder %s36_s11, 0  ;;  %s453_s28 = sshll.u32 %s170_s18, 3 }
  0x47   : > { %s469_s19 = sshll.u32 %s726_s16, 7  ;;  %s174_s21 = scalar_lea.vmem [#allocation2], %s453_s28 }
  0x48   : > { %s893_s25 = scalar_select %p39_p12, %s718_s14, %s41_s10  }
  0x49   : > { %s898_s4 = scalar_lea.hbm %s1001_s0, %s469_s19  ;;  %s184_s5 = sshll.u32 %s174_s21, 4  ;;  %s906_s5 = int_to_ptr.vmem [resolvable:$true] %s184_s5 }
  0x4a   : > { %p902_p11 = pnand %p500_p4, %p50_p2  ;;  %s171_s26 = scalar_lea.sflag [#allocation3], %s170_s18 }
  0x4b   : > { %s614_s7 = scalar_lea.hbm %s898_s4, 128  ;;  %s619_s11 = scalar_lea.hbm %s1001_s0, 256 }
  0x4c   : > { %p615_p0 = scmp.ne.s32.totalorder %s898_s4, %s614_s7  ;;  %p616_p3 = pneg %p902_p11 }
  0x4d   : > { %p620_p10 = scmp.lt.u32.totalorder %s898_s4, %s1001_s0  ;;  %p621_p13 = scmp.lt.u32.totalorder %s619_s11, %s614_s7 }
  0x4e   : > { %p617_p5 = pnand %p616_p3, %p615_p0  ;;  %p623_p1 = scmp.lt.u32.totalorder %s614_s7, %s898_s4 }
  0x4f   : > { %p622_p9 = por %p621_p13, %p620_p10 }
  0x50   : > { %p618_p7 = pneg %p617_p5 }
  0x51   : > { %p624_p4 = por %p623_p1, %p622_p9 }
  0x53   : > { %p625_p2 = pnand %p624_p4, %p618_p7 }
  0x55   : > { %628 = shalt.err (!%p625_p2)
}
  0x56   : > { %s629_s18 = scalar_lea.vmem %s906_s5, 128  ;;  %s734_s27 = smov [#allocation2]  }
  0x57   : > { %p630_p6 = scmp.ne.s32.totalorder %s906_s5, %s629_s18  ;;  %s634_s30 = sshll.u32 %s734_s27, 4  ;;  %s635_s30 = int_to_ptr.vmem [resolvable:$false] %s634_s30 }
  0x58   : > { %s636_s21 = scalar_lea.vmem %s635_s30, 256  ;;  %p637_p5 = scmp.lt.s32.totalorder %s906_s5, %s635_s30 }
  0x59   : > { %p632_p12 = pnand %p630_p6, %p616_p3  ;;  %p638_p10 = scmp.lt.s32.totalorder %s636_s21, %s629_s18 }
  0x5b   : > { %p633_p0 = pneg %p632_p12  ;;  %p639_p13 = por %p638_p10, %p637_p5 }
  0x5d   : > { %p640_p9 = pnand %p639_p13, %p633_p0 }
  0x5f   : > { %643 = shalt.err (!%p640_p9)
}
  0x60   : > { %493 = dma.hbm_to_vmem [thread:$0]  (!%p902_p11), %s898_s4, 128, %s906_s5, %s171_s26  }
  0x61   : > { %p1018_p7 = scmp.ne.s32.totalorder %s1013_s24, 0 }
  0x62   : > { %s936_s7 = sand.u32 (!%p1018_p7), 1, %s714_s13   ;;  %p1019_p3 = scmp.ne.s32.totalorder (!%p1018_p7), %s1011_s22, 0 }
  0x63   : > { %193 = sbr.rel (%p1018_p7) target bundleno = 346 (0x15a), region = 32  ;;  %s457_s8 = sshll.u32 (!%p1018_p7), %s936_s7, 3 }
  0x64   : > { %s196_s10 = scalar_lea.sflag (!%p1018_p7), [#allocation3], %s936_s7  ;;  %s199_s11 = scalar_lea.vmem (!%p1018_p7), [#allocation2], %s457_s8 }
  0x6a   : > { %697 = dma.done.wait (%p1019_p3), %s196_s10, 128  }
  0x6b   : > { %699 = vsyncadd (%p1019_p3), %s196_s10, 4294967168  ;;  %p1020_p1 = scmp.ne.s32.totalorder %s1009_s20, 0 }
  0x6d   : > { %701 = dma.done.wait (%p1020_p1), [#allocation6], 128  }
  0x6e   : > { %703 = vsyncadd (%p1020_p1), [#allocation6], 4294967168  ;;  %v735_v0 = vmov 0.0   ;;  %v736_v1 = vmov 0   ;;  %v233_v2 = vld [vmem:[%s199_s11] sm:$0xff]  ;;  %vm246_vm0 = vcmask 1043456  }
  0x6f   : > { %315 = vmatprep.mubr.f32.mxu0 %v735_v0  ;;  %556 = vset.pattern.permute.xlu0 %v736_v1  ;;  %v234_v3 = vld [vmem:[#allocation7] sm:$0x7]  ;;  %v241_v4 = vcombine.high %v233_v2, %v233_v2  ;;  %v232_v5 = vld [vmem:[#allocation5] sm:$0x7]  ;;  %vm242_vm1 = vcmask 31744   ;;  %s470_s20 = sshll.u32 %s722_s15, 7 }
  0x70   : > { %237 = vperm.xlu0 %556, %v234_v3   ;;  %s229_s22 = scalar_lea.vmem [#allocation8], %s457_s8  ;;  %s952_s6 = scalar_lea.hbm %s1004_s3, %s470_s20 }
  0x71   : > { %461 = vmatprep.subr.msk.mxu0 %vm246_vm0, %v241_v4  ;;  %s344_s24 = sshll.u32 %s229_s22, 4  ;;  %s328_s26 = scalar_lea.sflag [#allocation4], %s936_s7  ;;  %s954_s24 = int_to_ptr.vmem [resolvable:$true] %s344_s24 }
  0x72   : > { %462 = vmatpush1.msk.msra.mxu0 %vm246_vm0, %v233_v2  ;;  %s644_s28 = scalar_lea.vmem %s954_s24, 128  ;;  %s737_s15 = smov [#allocation8]  }
  0x73   : > { %463 = vmatmul.mubr.msk.f32.vlgmr.msra.gmra.mrb[0].mxu0 %vm242_vm1, %v232_v5  ;;  %p645_p11 = scmp.ne.s32.totalorder %s954_s24, %s644_s28  ;;  %s648_s19 = sshll.u32 %s737_s15, 4  ;;  %s649_s19 = int_to_ptr.vmem [resolvable:$false] %s648_s19 }
  0x74   : > { %s650_s18 = scalar_lea.vmem %s649_s19, 256  ;;  %p651_p6 = scmp.lt.s32.totalorder %s954_s24, %s649_s19 }
  0x75   : > { %p646_p4 = pnand %p645_p11, %p884_p8  ;;  %p652_p12 = scmp.lt.s32.totalorder %s650_s18, %s644_s28 }
  0x77   : > { %p647_p2 = pneg %p646_p4  ;;  %p653_p0 = por %p652_p12, %p651_p6 }
  0x79   : > { %p654_p5 = pnand %p653_p0, %p647_p2 }
  0xef   : > { %v238_v6 = vpop.permute.xlu0 %237 }
 0x146   : > { %v317_v7 = vpop.f32.mrb[0].mxu0 }
 0x147   : > { %v318_v8 = vadd.f32 %v317_v7, %v238_v6  ;;  %v319_v9 = vpop.f32.mrb[1].mxu0 }
 0x148   : > { %v320_v10 = vadd.f32 %v319_v9, %v238_v6 }
 0x14a   : > { %v324_v11 = vcombine.low %v318_v8, %v320_v10 }
 0x14c   : > { %326 = vst [vmem:[%s229_s22] sm:$0x77] %v324_v11 }
 0x14d   : > { %657 = shalt.err (!%p654_p5)
}
 0x14e   : > { %s658_s27 = scalar_lea.hbm %s952_s6, 128  ;;  %s662_s7 = scalar_lea.hbm %s1004_s3, 256 }
 0x14f   : > { %p659_p10 = scmp.ne.s32.totalorder %s952_s6, %s658_s27  ;;  %p663_p7 = scmp.lt.u32.totalorder %s952_s6, %s1004_s3 }
 0x150   : > { %p664_p3 = scmp.lt.u32.totalorder %s662_s7, %s658_s27  ;;  %p666_p11 = scmp.lt.u32.totalorder %s658_s27, %s952_s6 }
 0x151   : > { %p660_p13 = pnand %p659_p10, %p884_p8 }
 0x152   : > { %p665_p1 = por %p664_p3, %p663_p7 }
 0x153   : > { %p661_p9 = pneg %p660_p13 }
 0x154   : > { %p667_p4 = por %p666_p11, %p665_p1 }
 0x156   : > { %p668_p2 = pnand %p667_p4, %p661_p9 }
 0x158   : > { %671 = shalt.err (!%p668_p2)
}
 0x159   : > { %481 = dma.vmem_to_hbm [thread:$0]  (%p884_p8), %s954_s24, 128, %s952_s6, %s328_s26  }
 0x15a PF: > { %s356_s11 = sand.u32 1, %s710_s12   ;;  %p1021_p6 = scmp.ne.s32.totalorder %s1012_s23, 0 }
 0x15b   : > { %p1022_p12 = scmp.ge.s32.totalorder %s730_s17, 2  ;;  %s357_s20 = scalar_lea.sflag [#allocation4], %s356_s11 }
 0x15d   : > { %p495_p0 = pnand %p1022_p12, %p1021_p6 }
 0x15f   : > { %705 = dma.done.wait (!%p495_p0), %s357_s20, 128  }
 0x160   : > { %707 = vsyncadd (!%p495_p0), %s357_s20, 4294967168  ;;  %s20_s17 = sadd.s32 1, %s730_s17   ;;  %s1023_s12 = smov %s714_s13 }
 0x161   : > { %p17_p5 = scmp.ge.s32.totalorder %s20_s17, 4   ;;  %s1024_s13 = smov %s718_s14 }
 0x162   : > { %s1025_s14 = smov %s893_s25  ;;  %s1026_s15 = smov %s726_s16 }
 0x163   : > { %s1027_s16 = smov %s1029_s9  ;;  %19 = sbr.rel (!%p17_p5) target bundleno = 7 (0x7), region = 85 }
 0x16a   :  { %362 = vsyncpa [#allocation3], 1 }
 0x16b   :  { %364 = vsyncpa [#allocation3 + $0x1], 1 }
 0x16c   :  { %365 = vsyncpa [#allocation6], 1 }
 0x16d   :  { %366 = vsyncpa [#allocation4], 1 }
 0x16e   :  { %368 = vsyncpa [#allocation4 + $0x1], 1 }

</bundles_post_ra>
